<compile_context>
chip_gen: v5e
topology: v5e:2x2
jax: 0.10.0
libtpu: 0.0.40
codegen_flags: <defaults>
</compile_context>

<pallas_src>
import functools

import jax
import jax.numpy as jnp
from jax import lax
from jax.experimental import pallas as pl
from jax.experimental.pallas import tpu as pltpu


# ------------------------------ Pallas kernel --------------------------------

def _fused_stem_kernel(x_ref, w_ref, b_ref, o_ref, acc_ref, *,
                       H_out, W_out, QH, QW, Hp, Wp, pp, kT, is_pool):
    """Conv3d (one temporal tap per grid step) + BN + ReLU + 3x3/2 max pool.

    x_ref  : (1, 1, H_half, W_half, CF)    phase-packed input plane at t = t_out*sT+dt
    w_ref  : (1, QH*QW, CF, Cp)            BN-scale-folded weights for this temporal tap
    b_ref  : (1, 1, Cp)                    folded BN bias
    o_ref  : (1, 1, Hp, Wp, Cp)            pooled output plane (lane-dense Cp=128*k)
    acc_ref: (H_out+2*pp, W_out+2*pp, Cp)  f32 accumulator (pp = pool padding border)
    """
    dt = pl.program_id(2)
    cp = o_ref.shape[-1]

    @pl.when(dt == 0)
    def _init():
        acc_ref[...] = jnp.zeros_like(acc_ref)

    # Partial convolution for this temporal tap: QH*QW contiguous spatial taps,
    # each a single MXU matmul (M = H_out*W_out, K = CF, N = Cp), f32 accumulation.
    part = None
    for qh in range(QH):
        for qw in range(QW):
            xs = x_ref[0, 0, qh:qh + H_out, qw:qw + W_out, :]
            xs2 = xs.reshape(H_out * W_out, xs.shape[-1])
            d = jnp.dot(xs2, w_ref[0, qh * QW + qw],
                        preferred_element_type=jnp.float32)
            part = d if part is None else part + d
    part = part.reshape(H_out, W_out, cp)
    acc_ref[pl.ds(pp, H_out), pl.ds(pp, W_out), :] = (
        acc_ref[pl.ds(pp, H_out), pl.ds(pp, W_out), :] + part)

    @pl.when(dt == kT - 1)
    def _finalize():
        y = acc_ref[pl.ds(pp, H_out), pl.ds(pp, W_out), :]
        y = jnp.maximum(y + b_ref[...], 0.0)            # folded BN bias + ReLU
        if not is_pool:
            o_ref[0, 0] = y.astype(o_ref.dtype)
        else:
            # Store the activated plane back (the zero border is a valid pool
            # identity because post-ReLU values are >= 0), then take the
            # 3x3/stride-2 window max with nine strided VMEM reads.  Only the
            # pooled plane is written to HBM.
            acc_ref[pl.ds(pp, H_out), pl.ds(pp, W_out), :] = y
            pooled = None
            for dh in range(3):
                for dw in range(3):
                    v = acc_ref[pl.ds(dh, Hp, stride=2),
                                pl.ds(dw, Wp, stride=2), :]
                    pooled = v if pooled is None else jnp.maximum(pooled, v)
            o_ref[0, 0] = pooled.astype(o_ref.dtype)


# ------------------------------ JAX glue (cheap) ------------------------------

def _space_to_phase(x_ndhwc, kernel, stride, padding, conv_dims):
    """Zero-pad and phase-split H, W by the conv stride; phases go to channels.

    Output shape (N, T_p, H_half, W_half, sH*sW*Cin); total bytes ~= padded input
    (no im2col inflation).  Conv taps become contiguous shifts of this array.
    """
    N, T, H, W, Cin = x_ndhwc.shape
    _, kH, kW = kernel
    _, sH, sW = stride
    pT, pH, pW = padding
    _, H_out, W_out = conv_dims
    QH = (kH - 1) // sH + 1
    QW = (kW - 1) // sW + 1
    H_half = H_out + QH - 1
    W_half = W_out + QW - 1
    H_tgt = sH * H_half
    W_tgt = sW * W_half
    x = jnp.pad(x_ndhwc, ((0, 0),
                          (pT, pT),
                          (pH, max(0, H_tgt - H - pH)),
                          (pW, max(0, W_tgt - W - pW)),
                          (0, 0)))
    x = x[:, :, :H_tgt, :W_tgt, :]
    T_p = x.shape[1]
    x = x.reshape(N, T_p, H_half, sH, W_half, sW, Cin)
    x = jnp.transpose(x, (0, 1, 2, 4, 3, 5, 6))
    x = x.reshape(N, T_p, H_half, W_half, sH * sW * Cin)
    return x, H_half, W_half, QH, QW


def _fold_bn_pack_weights(params, stride, cout_pad, eps, compute_dtype):
    """Fold eval-mode BN scale into the conv weights and pack them per
    (temporal tap, spatial phase-tap) as (kT, QH*QW, sH*sW*Cin, cout_pad)."""
    w = params["conv_w"]                              # (Cout, Cin, kT, kH, kW)
    Cout, Cin, kT, kH, kW = w.shape
    _, sH, sW = stride
    QH = (kH - 1) // sH + 1
    QW = (kW - 1) // sW + 1
    scale = params["bn_gamma"] / jnp.sqrt(params["bn_var"] + eps)   # (Cout,)
    bias = params["bn_beta"] - params["bn_mean"] * scale
    w_s = w * scale[:, None, None, None, None]
    w_t = jnp.transpose(w_s, (2, 3, 4, 1, 0))         # (kT, kH, kW, Cin, Cout)
    w_t = jnp.pad(w_t, ((0, 0), (0, QH * sH - kH), (0, QW * sW - kW),
                        (0, 0), (0, cout_pad - Cout)))
    w_q = w_t.reshape(kT, QH, sH, QW, sW, Cin, cout_pad)
    w_q = jnp.transpose(w_q, (0, 1, 3, 2, 4, 5, 6))   # (kT,QH,QW,rh,rw,Cin,Cp)
    w_q = w_q.reshape(kT, QH * QW, sH * sW * Cin, cout_pad).astype(compute_dtype)
    bias_p = jnp.pad(bias, (0, cout_pad - Cout)).reshape(1, 1, cout_pad)
    return w_q, bias_p.astype(jnp.float32)


# ------------------------- ResNetBasicStem forward ---------------------------

@functools.partial(jax.jit, static_argnames=(
    "kernel", "stride", "padding", "is_pool", "pool_pad", "eps", "compute_dtype"))
def _resnet_stem_forward(x_ncdhw, params, *, kernel, stride, padding,
                         is_pool=True, pool_pad=True, eps=1e-5,
                         compute_dtype=jnp.float32):
    N, _, T, H, W = x_ncdhw.shape
    kT, kH, kW = kernel
    sT, sH, sW = stride
    pT, pH, pW = padding
    Cout = params["conv_w"].shape[0]

    T_out = (T + 2 * pT - kT) // sT + 1
    H_out = (H + 2 * pH - kH) // sH + 1
    W_out = (W + 2 * pW - kW) // sW + 1

    if is_pool:
        pp = 1 if pool_pad else 0
        Hp = (H_out + 2 * pp - 3) // 2 + 1
        Wp = (W_out + 2 * pp - 3) // 2 + 1
    else:
        pp = 0
        Hp, Wp = H_out, W_out

    cout_pad = ((Cout + 127) // 128) * 128            # lane-dense output channels

    x = jnp.transpose(x_ncdhw, (0, 2, 3, 4, 1)).astype(compute_dtype)   # NDHWC
    x_s2d, H_half, W_half, QH, QW = _space_to_phase(
        x, kernel, stride, padding, (T_out, H_out, W_out))
    CF = x_s2d.shape[-1]

    w_q, bias = _fold_bn_pack_weights(params, stride, cout_pad, eps, compute_dtype)

    kern = functools.partial(
        _fused_stem_kernel, H_out=H_out, W_out=W_out, QH=QH, QW=QW,
        Hp=Hp, Wp=Wp, pp=pp, kT=kT, is_pool=is_pool)

    out = pl.pallas_call(
        kern,
        out_shape=jax.ShapeDtypeStruct((N, T_out, Hp, Wp, cout_pad), jnp.float32),
        grid=(N, T_out, kT),
        in_specs=[
            pl.BlockSpec((1, 1, H_half, W_half, CF),
                         lambda n, t, dt: (n, t * sT + dt, 0, 0, 0)),
            pl.BlockSpec((1, QH * QW, CF, cout_pad),
                         lambda n, t, dt: (dt, 0, 0, 0)),
            pl.BlockSpec((1, 1, cout_pad), lambda n, t, dt: (0, 0, 0)),
        ],
        out_specs=pl.BlockSpec((1, 1, Hp, Wp, cout_pad),
                               lambda n, t, dt: (n, t, 0, 0, 0)),
        scratch_shapes=[pltpu.VMEM((H_out + 2 * pp, W_out + 2 * pp, cout_pad),
                                   jnp.float32)],
        compiler_params=pltpu.CompilerParams(
            dimension_semantics=("parallel", "parallel", "arbitrary"),
            vmem_limit_bytes=48 * 1024 * 1024),   # explicit; safe on v5e/v6e/v7x
    )(x_s2d, w_q, bias)

    # Drop the channel padding and go back to NCDHW (XLA fuses slice + transpose).
    return jnp.transpose(out[..., :Cout], (0, 4, 1, 2, 3))


def resnet_basic_stem_forward(x, params, kernel, stride, padding,
                              is_pool=True, pool_pad=True, eps=1e-5,
                              compute_dtype=jnp.float32):
    return _resnet_stem_forward(
        x, params, kernel=tuple(kernel), stride=tuple(stride),
        padding=tuple(padding), is_pool=is_pool, pool_pad=pool_pad, eps=eps,
        compute_dtype=compute_dtype)


# --------------------------- VideoModelStem forward ---------------------------

def video_model_stem_forward(xs, params_list, kernels, strides, paddings,
                             pool_pad=True, compute_dtype=jnp.float32):
    # TODO(synk): PGT cache branch (cfg.PGT.ENABLE) is stateful / config dependent;
    # this implements the cfg.PGT.ENABLE == False path (stem_func_name='resnet_stem',
    # is_pool=True).  The X3DStem variant is not used by this config.
    assert len(xs) == len(params_list) == len(kernels) == len(strides) == len(paddings)
    outs = []
    for p in range(len(xs)):
        outs.append(resnet_basic_stem_forward(
            xs[p], params_list[p], kernels[p], strides[p], paddings[p],
            is_pool=True, pool_pad=pool_pad, compute_dtype=compute_dtype))
    return outs


# ------------------------------- reference -----------------------------------

def _reference_stem(x, params, kernel, stride, padding, eps=1e-5, pool_pad=True):
    w = params["conv_w"]
    y = lax.conv_general_dilated(
        x, w, window_strides=tuple(stride),
        padding=[(padding[0],) * 2, (padding[1],) * 2, (padding[2],) * 2],
        dimension_numbers=("NCDHW", "OIDHW", "NCDHW"))
    gamma = params["bn_gamma"][None, :, None, None, None]
    beta = params["bn_beta"][None, :, None, None, None]
    mean = params["bn_mean"][None, :, None, None, None]
    var = params["bn_var"][None, :, None, None, None]
    y = (y - mean) / jnp.sqrt(var + eps) * gamma + beta
    y = jnp.maximum(y, 0.0)
    pad = 1 if pool_pad else 0
    y = lax.reduce_window(
        y, -jnp.inf, lax.max,
        window_dimensions=(1, 1, 1, 3, 3),
        window_strides=(1, 1, 1, 2, 2),
        padding=((0, 0), (0, 0), (0, 0), (pad, pad), (pad, pad)))
    return y


def _init_stem_params(key, dim_in, dim_out, kernel):
    k1, k2, k3, k4, k5 = jax.random.split(key, 5)
    return {
        "conv_w": 0.1 * jax.random.normal(k1, (dim_out, dim_in, *kernel), jnp.float32),
        "bn_gamma": jax.random.uniform(k2, (dim_out,), jnp.float32, 0.5, 1.5),
        "bn_beta": 0.1 * jax.random.normal(k3, (dim_out,), jnp.float32),
        "bn_mean": 0.1 * jax.random.normal(k4, (dim_out,), jnp.float32),
        "bn_var": jax.random.uniform(k5, (dim_out,), jnp.float32, 0.5, 1.5),
    }


if __name__ == "__main__":
    key = jax.random.PRNGKey(0)

    # Two-pathway (SlowFast-style) config, stem_func_name='resnet_stem'.
    dim_in = [3, 3]
    dim_out = [8, 8]
    kernels = [[1, 3, 3], [3, 3, 3]]
    strides = [[1, 2, 2], [1, 2, 2]]
    paddings = [[0, 1, 1], [1, 1, 1]]
    Ts = [4, 8]
    N, H, W = 2, 16, 16

    kx0, kx1, kp0, kp1 = jax.random.split(key, 4)
    xs = [
        jax.random.normal(kx0, (N, dim_in[0], Ts[0], H, W), jnp.float32),
        jax.random.normal(kx1, (N, dim_in[1], Ts[1], H, W), jnp.float32),
    ]
    params = [
        _init_stem_params(kp0, dim_in[0], dim_out[0], kernels[0]),
        _init_stem_params(kp1, dim_in[1], dim_out[1], kernels[1]),
    ]

    refs = [_reference_stem(xs[p], params[p], kernels[p], strides[p], paddings[p])
            for p in range(len(xs))]

    # f32 path (exact semantics of the PyTorch module, eval-mode BN).
    outs = video_model_stem_forward(xs, params, kernels, strides, paddings)
    outs = [jax.block_until_ready(o) for o in outs]
    for p in range(len(xs)):
        assert outs[p].shape == refs[p].shape, (outs[p].shape, refs[p].shape)
        err = float(jnp.max(jnp.abs(outs[p] - refs[p])))
        assert jnp.allclose(outs[p], refs[p], atol=1e-4, rtol=1e-4), err

    # bf16 matmul-input path (HBM-traffic optimization for v6e/v7x); f32 accumulation.
    outs_bf16 = video_model_stem_forward(xs, params, kernels, strides, paddings,
                                         compute_dtype=jnp.bfloat16)
    outs_bf16 = [jax.block_until_ready(o) for o in outs_bf16]
    for p in range(len(xs)):
        err = float(jnp.max(jnp.abs(outs_bf16[p] - refs[p])))
        assert jnp.allclose(outs_bf16[p], refs[p], atol=0.15, rtol=0.05), err

    print("KERNEL_OK")
</pallas_src>

<mosaic_0001>
module attributes {stable_mosaic.version = 11 : i64} {
  func.func @_fused_stem_kernel(%arg0: i32, %arg1: i32, %arg2: i32, %arg3: memref<1x1x9x9x12xf32, #tpu.memory_space<vmem>>, %arg4: memref<1x4x12x128xf32, #tpu.memory_space<vmem>>, %arg5: memref<1x1x128xf32, #tpu.memory_space<vmem>>, %arg6: memref<1x1x4x4x128xf32, #tpu.memory_space<vmem>>, %arg7: memref<10x10x128xf32, #tpu.memory_space<vmem>>) attributes {dimension_semantics = [#tpu.dimension_semantics<parallel>, #tpu.dimension_semantics<parallel>, #tpu.dimension_semantics<arbitrary>], iteration_bounds = array<i64: 2, 4, 1>, scalar_prefetch = 0 : i64, scratch_operands = 1 : i64, tpu.core_type = #tpu.core_type<tc>, window_params = [{transform_indices = @transform_0, window_bounds = array<i64: 1, 1, 9, 9, 12>}, {transform_indices = @transform_1, window_bounds = array<i64: 1, 4, 12, 128>}, {pipeline_mode = #tpu.pipeline_mode<synchronous>, transform_indices = @transform_2, window_bounds = array<i64: 1, 1, 128>}, {transform_indices = @transform_3, window_bounds = array<i64: 1, 1, 4, 4, 128>}]} {
    %c0_i32 = arith.constant 0 : i32
    %0 = arith.cmpi eq, %arg2, %c0_i32 : i32
    %1 = arith.extui %0 : i1 to i32
    %c0_i32_0 = arith.constant 0 : i32
    %2 = arith.cmpi ne, %1, %c0_i32_0 : i32
    scf.if %2 {
      %cst_44 = arith.constant 0.000000e+00 : f32
      %37 = vector.broadcast %cst_44 : f32 to vector<10x10x128xf32>
      %c0_45 = arith.constant 0 : index
      %c0_46 = arith.constant 0 : index
      %c0_47 = arith.constant 0 : index
      %38 = vector.load %arg7[%c0_45, %c0_46, %c0_47] : memref<10x10x128xf32, #tpu.memory_space<vmem>>, vector<10x10x128xf32>
      tpu.vector_store %arg7[%c0_45, %c0_46, %c0_47], %37 {strides = array<i32>} : memref<10x10x128xf32, #tpu.memory_space<vmem>>, vector<10x10x128xf32>,
    } else {
    }
    %c0 = arith.constant 0 : index
    %c0_1 = arith.constant 0 : index
    %c0_2 = arith.constant 0 : index
    %c0_3 = arith.constant 0 : index
    %c0_4 = arith.constant 0 : index
    %3 = vector.load %arg3[%c0, %c0_1, %c0_2, %c0_3, %c0_4] : memref<1x1x9x9x12xf32, #tpu.memory_space<vmem>>, vector<1x1x8x8x12xf32>
    %4 = vector.shape_cast %3 : vector<1x1x8x8x12xf32> to vector<8x8x12xf32>
    %5 = vector.shape_cast %4 : vector<8x8x12xf32> to vector<64x12xf32>
    %c0_5 = arith.constant 0 : index
    %c0_6 = arith.constant 0 : index
    %c0_7 = arith.constant 0 : index
    %c0_8 = arith.constant 0 : index
    %6 = vector.load %arg4[%c0_5, %c0_6, %c0_7, %c0_8] : memref<1x4x12x128xf32, #tpu.memory_space<vmem>>, vector<1x1x12x128xf32>
    %7 = vector.shape_cast %6 : vector<1x1x12x128xf32> to vector<12x128xf32>
    %cst = arith.constant dense<0.000000e+00> : vector<64x128xf32>
    %8 = tpu.matmul %5, %7, %cst {dimension_numbers = #tpu.dot_dimension_numbers<[1], [0], [0], [1], [0, 0, 1, 1], [], []>} : vector<64x12xf32>, vector<12x128xf32>, vector<64x128xf32> -> vector<64x128xf32>
    %c0_9 = arith.constant 0 : index
    %c0_10 = arith.constant 0 : index
    %c0_11 = arith.constant 0 : index
    %c1 = arith.constant 1 : index
    %c0_12 = arith.constant 0 : index
    %9 = vector.load %arg3[%c0_9, %c0_10, %c0_11, %c1, %c0_12] : memref<1x1x9x9x12xf32, #tpu.memory_space<vmem>>, vector<1x1x8x8x12xf32>
    %10 = vector.shape_cast %9 : vector<1x1x8x8x12xf32> to vector<8x8x12xf32>
    %11 = vector.shape_cast %10 : vector<8x8x12xf32> to vector<64x12xf32>
    %c0_13 = arith.constant 0 : index
    %c1_14 = arith.constant 1 : index
    %c0_15 = arith.constant 0 : index
    %c0_16 = arith.constant 0 : index
    %12 = vector.load %arg4[%c0_13, %c1_14, %c0_15, %c0_16] : memref<1x4x12x128xf32, #tpu.memory_space<vmem>>, vector<1x1x12x128xf32>
    %13 = vector.shape_cast %12 : vector<1x1x12x128xf32> to vector<12x128xf32>
    %cst_17 = arith.constant dense<0.000000e+00> : vector<64x128xf32>
    %14 = tpu.matmul %11, %13, %cst_17 {dimension_numbers = #tpu.dot_dimension_numbers<[1], [0], [0], [1], [0, 0, 1, 1], [], []>} : vector<64x12xf32>, vector<12x128xf32>, vector<64x128xf32> -> vector<64x128xf32>
    %15 = arith.addf %8, %14 : vector<64x128xf32>
    %c0_18 = arith.constant 0 : index
    %c0_19 = arith.constant 0 : index
    %c1_20 = arith.constant 1 : index
    %c0_21 = arith.constant 0 : index
    %c0_22 = arith.constant 0 : index
    %16 = vector.load %arg3[%c0_18, %c0_19, %c1_20, %c0_21, %c0_22] : memref<1x1x9x9x12xf32, #tpu.memory_space<vmem>>, vector<1x1x8x8x12xf32>
    %17 = vector.shape_cast %16 : vector<1x1x8x8x12xf32> to vector<8x8x12xf32>
    %18 = vector.shape_cast %17 : vector<8x8x12xf32> to vector<64x12xf32>
    %c0_23 = arith.constant 0 : index
    %c2 = arith.constant 2 : index
    %c0_24 = arith.constant 0 : index
    %c0_25 = arith.constant 0 : index
    %19 = vector.load %arg4[%c0_23, %c2, %c0_24, %c0_25] : memref<1x4x12x128xf32, #tpu.memory_space<vmem>>, vector<1x1x12x128xf32>
    %20 = vector.shape_cast %19 : vector<1x1x12x128xf32> to vector<12x128xf32>
    %cst_26 = arith.constant dense<0.000000e+00> : vector<64x128xf32>
    %21 = tpu.matmul %18, %20, %cst_26 {dimension_numbers = #tpu.dot_dimension_numbers<[1], [0], [0], [1], [0, 0, 1, 1], [], []>} : vector<64x12xf32>, vector<12x128xf32>, vector<64x128xf32> -> vector<64x128xf32>
    %22 = arith.addf %15, %21 : vector<64x128xf32>
    %c0_27 = arith.constant 0 : index
    %c0_28 = arith.constant 0 : index
    %c1_29 = arith.constant 1 : index
    %c1_30 = arith.constant 1 : index
    %c0_31 = arith.constant 0 : index
    %23 = vector.load %arg3[%c0_27, %c0_28, %c1_29, %c1_30, %c0_31] : memref<1x1x9x9x12xf32, #tpu.memory_space<vmem>>, vector<1x1x8x8x12xf32>
    %24 = vector.shape_cast %23 : vector<1x1x8x8x12xf32> to vector<8x8x12xf32>
    %25 = vector.shape_cast %24 : vector<8x8x12xf32> to vector<64x12xf32>
    %c0_32 = arith.constant 0 : index
    %c3 = arith.constant 3 : index
    %c0_33 = arith.constant 0 : index
    %c0_34 = arith.constant 0 : index
    %26 = vector.load %arg4[%c0_32, %c3, %c0_33, %c0_34] : memref<1x4x12x128xf32, #tpu.memory_space<vmem>>, vector<1x1x12x128xf32>
    %27 = vector.shape_cast %26 : vector<1x1x12x128xf32> to vector<12x128xf32>
    %cst_35 = arith.constant dense<0.000000e+00> : vector<64x128xf32>
    %28 = tpu.matmul %25, %27, %cst_35 {dimension_numbers = #tpu.dot_dimension_numbers<[1], [0], [0], [1], [0, 0, 1, 1], [], []>} : vector<64x12xf32>, vector<12x128xf32>, vector<64x128xf32> -> vector<64x128xf32>
    %29 = arith.addf %22, %28 : vector<64x128xf32>
    %30 = vector.shape_cast %29 : vector<64x128xf32> to vector<8x8x128xf32>
    %c1_36 = arith.constant 1 : index
    %c1_37 = arith.constant 1 : index
    %c0_38 = arith.constant 0 : index
    %31 = vector.load %arg7[%c1_36, %c1_37, %c0_38] : memref<10x10x128xf32, #tpu.memory_space<vmem>>, vector<8x8x128xf32>
    %32 = arith.addf %31, %30 : vector<8x8x128xf32>
    %c1_39 = arith.constant 1 : index
    %c1_40 = arith.constant 1 : index
    %c0_41 = arith.constant 0 : index
    %33 = vector.load %arg7[%c1_39, %c1_40, %c0_41] : memref<10x10x128xf32, #tpu.memory_space<vmem>>, vector<8x8x128xf32>
    tpu.vector_store %arg7[%c1_39, %c1_40, %c0_41], %32 {strides = array<i32>} : memref<10x10x128xf32, #tpu.memory_space<vmem>>, vector<8x8x128xf32>,
    %c0_i32_42 = arith.constant 0 : i32
    %34 = arith.cmpi eq, %arg2, %c0_i32_42 : i32
    %35 = arith.extui %34 : i1 to i32
    %c0_i32_43 = arith.constant 0 : i32
    %36 = arith.cmpi ne, %35, %c0_i32_43 : i32
    scf.if %36 {
      %c1_44 = arith.constant 1 : index
      %c1_45 = arith.constant 1 : index
      %c0_46 = arith.constant 0 : index
      %37 = vector.load %arg7[%c1_44, %c1_45, %c0_46] : memref<10x10x128xf32, #tpu.memory_space<vmem>>, vector<8x8x128xf32>
      %c0_47 = arith.constant 0 : index
      %c0_48 = arith.constant 0 : index
      %c0_49 = arith.constant 0 : index
      %38 = vector.load %arg5[%c0_47, %c0_48, %c0_49] : memref<1x1x128xf32, #tpu.memory_space<vmem>>, vector<1x1x128xf32>
      %39 = vector.broadcast %38 : vector<1x1x128xf32> to vector<8x8x128xf32>
      %40 = arith.addf %37, %39 : vector<8x8x128xf32>
      %cst_50 = arith.constant 0.000000e+00 : f32
      %41 = vector.broadcast %cst_50 : f32 to vector<8x8x128xf32>
      %42 = arith.maximumf %40, %41 : vector<8x8x128xf32>
      %c1_51 = arith.constant 1 : index
      %c1_52 = arith.constant 1 : index
      %c0_53 = arith.constant 0 : index
      %43 = vector.load %arg7[%c1_51, %c1_52, %c0_53] : memref<10x10x128xf32, #tpu.memory_space<vmem>>, vector<8x8x128xf32>
      tpu.vector_store %arg7[%c1_51, %c1_52, %c0_53], %42 {strides = array<i32>} : memref<10x10x128xf32, #tpu.memory_space<vmem>>, vector<8x8x128xf32>,
      %c0_54 = arith.constant 0 : index
      %c0_55 = arith.constant 0 : index
      %c0_56 = arith.constant 0 : index
      %44 = tpu.strided_load %arg7[%c0_54, %c0_55, %c0_56] {strides = array<i32: 2, 2, 1>} : memref<10x10x128xf32, #tpu.memory_space<vmem>>, vector<4x4x128xf32>
      %c0_57 = arith.constant 0 : index
      %c1_58 = arith.constant 1 : index
      %c0_59 = arith.constant 0 : index
      %45 = tpu.strided_load %arg7[%c0_57, %c1_58, %c0_59] {strides = array<i32: 2, 2, 1>} : memref<10x10x128xf32, #tpu.memory_space<vmem>>, vector<4x4x128xf32>
      %46 = arith.maximumf %44, %45 : vector<4x4x128xf32>
      %c0_60 = arith.constant 0 : index
      %c2_61 = arith.constant 2 : index
      %c0_62 = arith.constant 0 : index
      %47 = tpu.strided_load %arg7[%c0_60, %c2_61, %c0_62] {strides = array<i32: 2, 2, 1>} : memref<10x10x128xf32, #tpu.memory_space<vmem>>, vector<4x4x128xf32>
      %48 = arith.maximumf %46, %47 : vector<4x4x128xf32>
      %c1_63 = arith.constant 1 : index
      %c0_64 = arith.constant 0 : index
      %c0_65 = arith.constant 0 : index
      %49 = tpu.strided_load %arg7[%c1_63, %c0_64, %c0_65] {strides = array<i32: 2, 2, 1>} : memref<10x10x128xf32, #tpu.memory_space<vmem>>, vector<4x4x128xf32>
      %50 = arith.maximumf %48, %49 : vector<4x4x128xf32>
      %c1_66 = arith.constant 1 : index
      %c1_67 = arith.constant 1 : index
      %c0_68 = arith.constant 0 : index
      %51 = tpu.strided_load %arg7[%c1_66, %c1_67, %c0_68] {strides = array<i32: 2, 2, 1>} : memref<10x10x128xf32, #tpu.memory_space<vmem>>, vector<4x4x128xf32>
      %52 = arith.maximumf %50, %51 : vector<4x4x128xf32>
      %c1_69 = arith.constant 1 : index
      %c2_70 = arith.constant 2 : index
      %c0_71 = arith.constant 0 : index
      %53 = tpu.strided_load %arg7[%c1_69, %c2_70, %c0_71] {strides = array<i32: 2, 2, 1>} : memref<10x10x128xf32, #tpu.memory_space<vmem>>, vector<4x4x128xf32>
      %54 = arith.maximumf %52, %53 : vector<4x4x128xf32>
      %c2_72 = arith.constant 2 : index
      %c0_73 = arith.constant 0 : index
      %c0_74 = arith.constant 0 : index
      %55 = tpu.strided_load %arg7[%c2_72, %c0_73, %c0_74] {strides = array<i32: 2, 2, 1>} : memref<10x10x128xf32, #tpu.memory_space<vmem>>, vector<4x4x128xf32>
      %56 = arith.maximumf %54, %55 : vector<4x4x128xf32>
      %c2_75 = arith.constant 2 : index
      %c1_76 = arith.constant 1 : index
      %c0_77 = arith.constant 0 : index
      %57 = tpu.strided_load %arg7[%c2_75, %c1_76, %c0_77] {strides = array<i32: 2, 2, 1>} : memref<10x10x128xf32, #tpu.memory_space<vmem>>, vector<4x4x128xf32>
      %58 = arith.maximumf %56, %57 : vector<4x4x128xf32>
      %c2_78 = arith.constant 2 : index
      %c2_79 = arith.constant 2 : index
      %c0_80 = arith.constant 0 : index
      %59 = tpu.strided_load %arg7[%c2_78, %c2_79, %c0_80] {strides = array<i32: 2, 2, 1>} : memref<10x10x128xf32, #tpu.memory_space<vmem>>, vector<4x4x128xf32>
      %60 = arith.maximumf %58, %59 : vector<4x4x128xf32>
      %c0_81 = arith.constant 0 : index
      %c0_82 = arith.constant 0 : index
      %c0_83 = arith.constant 0 : index
      %c0_84 = arith.constant 0 : index
      %c0_85 = arith.constant 0 : index
      %61 = vector.load %arg6[%c0_81, %c0_82, %c0_83, %c0_84, %c0_85] : memref<1x1x4x4x128xf32, #tpu.memory_space<vmem>>, vector<1x1x4x4x128xf32>
      %62 = vector.shape_cast %61 : vector<1x1x4x4x128xf32> to vector<4x4x128xf32>
      %63 = vector.shape_cast %60 : vector<4x4x128xf32> to vector<1x1x4x4x128xf32>
      tpu.vector_store %arg6[%c0_81, %c0_82, %c0_83, %c0_84, %c0_85], %63 {strides = array<i32>} : memref<1x1x4x4x128xf32, #tpu.memory_space<vmem>>, vector<1x1x4x4x128xf32>,
    } else {
    }
    return
  }
  func.func @transform_0(%arg0: i32, %arg1: i32, %arg2: i32) -> (i32, i32, i32, i32, i32) {
    %c1_i32 = arith.constant 1 : i32
    %0 = arith.muli %arg1, %c1_i32 : i32
    %1 = arith.addi %0, %arg2 : i32
    %c0_i32 = arith.constant 0 : i32
    %c0_i32_0 = arith.constant 0 : i32
    %c0_i32_1 = arith.constant 0 : i32
    %c0_i32_2 = arith.constant 0 : i32
    return %arg0, %1, %c0_i32, %c0_i32_0, %c0_i32_1 : i32, i32, i32, i32, i32
  }
  func.func @transform_1(%arg0: i32, %arg1: i32, %arg2: i32) -> (i32, i32, i32, i32) {
    %c0_i32 = arith.constant 0 : i32
    %c0_i32_0 = arith.constant 0 : i32
    %c0_i32_1 = arith.constant 0 : i32
    %c0_i32_2 = arith.constant 0 : i32
    return %arg2, %c0_i32, %c0_i32_0, %c0_i32_1 : i32, i32, i32, i32
  }
  func.func @transform_2(%arg0: i32, %arg1: i32, %arg2: i32) -> (i32, i32, i32) {
    %c0_i32 = arith.constant 0 : i32
    %c0_i32_0 = arith.constant 0 : i32
    %c0_i32_1 = arith.constant 0 : i32
    %c0_i32_2 = arith.constant 0 : i32
    return %c0_i32, %c0_i32_0, %c0_i32_1 : i32, i32, i32
  }
  func.func @transform_3(%arg0: i32, %arg1: i32, %arg2: i32) -> (i32, i32, i32, i32, i32) {
    %c0_i32 = arith.constant 0 : i32
    %c0_i32_0 = arith.constant 0 : i32
    %c0_i32_1 = arith.constant 0 : i32
    %c0_i32_2 = arith.constant 0 : i32
    return %arg0, %arg1, %c0_i32, %c0_i32_0, %c0_i32_1 : i32, i32, i32, i32, i32
  }
}

</mosaic_0001>

<bundles_post_ra>
// kernel: _resnet_stem_forward.1
= control target key start
LH: loop header
LB: loop body
LE: loop exit
PB: predicated region body
PF: predicated region fallthrough
CT: control target
= control target key end

     0   :  { %s1080_s12 = smov 0   ;;  %s1082_s13 = smov 0   ;;  %s1249_s0 = inlined_call_operand.vmem [shape: f32[2,4,9,9,12], index: 0, kind: input, shape index: {}]   ;;  %s1250_s1 = inlined_call_operand.vmem [shape: f32[1,4,12,128], index: 1, kind: input, shape index: {}]   ;;  %s1251_s2 = inlined_call_operand.vmem [shape: f32[1,1,128], index: 2, kind: input, shape index: {}]   ;;  %s1252_s3 = inlined_call_operand.vmem [shape: f32[2,4,4,4,128], index: 3, kind: output, shape index: {}]  }
   0x1   :  { %s1084_s14 = smov 0   ;;  %s1086_s15 = smov 0  }
   0x2   :  { %s1088_s16 = smov 0  }
   0x3 LB: > { %s28_s17 = sadd.s32 1, %s1049_s14  ;;  %s32_s18 = sadd.s32 1, %s1053_s15  ;;  %s1057_s16 = sphi %s1088_s16, %s13_s16   ;;  %s1053_s15 = sphi %s1086_s15, %s1256_s15   ;;  %s1049_s14 = sphi %s1084_s14, %s1255_s14   ;;  %s1045_s13 = sphi %s1082_s13, %s1254_s13   ;;  %s1041_s12 = sphi %s1080_s12, %s1253_s12  }
   0x4   : > { %p30_p0 = scmp.ge.s32.totalorder %s28_s17, 4  ;;  %p910_p1 = scmp.ge.s32.totalorder %s1057_s16, 1 }
   0x5   : > { %p178_p2 = scmp.lt.s32.totalorder %s1057_s16, 9 }
   0x6   : > { %s1258_s17 = smov (%p30_p0, %s28_s17), 0  ;;  %s1260_s18 = smov (!%p30_p0, %s32_s18), %s1053_s15 }
   0x7   : > { %p179_p3 = pnand %p910_p1, %p178_p2  ;;  %p34_p4 = scmp.ge.s32.totalorder %s1260_s18, 2 }
   0x8   : > { %p217_p5 = scmp.lt.s32.totalorder (!%p179_p3), %s1045_s13, 1  ;;  %p219_p6 = scmp.lt.s32.totalorder (!%p179_p3), %s1041_s12, 3 }
   0x9   : > { %s1262_s18 = smov (%p34_p4, %s1260_s18), 0  ;;  %182 = sbr.rel (%p179_p3) target bundleno = 236 (0xec), region = 32 }
   0xe   : > { %vm311_vm0 = vcmask 1043456   ;;  %v944_v0 = vld [vmem:[%s1250_s1 + $0x28] sm:$0xf]  ;;  %v943_v1 = vld [vmem:[%s1250_s1 + $0x20] sm:$0xff]  ;;  %v963_v2 = vld [vmem:[%s1250_s1 + $0x38] sm:$0xf] }
   0xf   : > { %945 = vmatpush.msk.msra.mxu2 %vm311_vm0, %v944_v0  ;;  %964 = vmatpush.msk.msra.mxu3 %vm311_vm0, %v963_v2  ;;  %v916_v3 = vld [vmem:[%s1250_s1 + $0x18] sm:$0xf]  ;;  %v962_v4 = vld [vmem:[%s1250_s1 + $0x30] sm:$0xff]  ;;  %v274_v5 = vld [vmem:[%s1250_s1 + $0x8] sm:$0xf]  ;;  %s1264_s13 = smov (!%p217_p5, %s1045_s13), 1 }
  0x10   : > { %917 = vmatpush.msk.msra.mxu0 %vm311_vm0, %v916_v3  ;;  %v915_v6 = vld [vmem:[%s1250_s1 + $0x10] sm:$0xff]  ;;  %v273_v7 = vld [vmem:[%s1250_s1] sm:$0xff]  ;;  %926 = vmatpush.msk.msra.mxu1 %vm311_vm0, %v274_v5  ;;  %s1266_s12 = smov (!%p219_p6, %s1041_s12), 3  ;;  %s976_s8 = smul.u32 72, %s1264_s13  ;;  %vm286_vm1 = vcmask 97280   ;;  %v1059_v26 = vmov 0.0  }
  0x11   : > { %478 = vmatpush.msra.mxu2 %v943_v1  ;;  %565 = vmatpush.msra.mxu3 %v962_v4  ;;  %s975_s9 = smul.u32 18, %s1266_s12  ;;  %s912_s22 = sshll.u32 %s1266_s12, 2  ;;  %245 = vst [vmem:[#allocation2] sm:$0xff] %v1059_v26  ;;  %v1214_v35 = vld [vmem:[%s1251_s2] ss:$0 sm:$0xff] }
  0x12   : > { %330 = vmatpush.msra.mxu0 %v915_v6  ;;  %398 = vmatpush.msra.mxu1 %v273_v7  ;;  %s913_s23 = sshll.u32 %s1264_s13, 4  ;;  %246 = vst [vmem:[#allocation2 + $0x8] sm:$0x3] %v1059_v26 }
  0x13   : > { %s223_s10 = sadd.s32 %s976_s8, %s975_s9  ;;  %s1185_s24 = sadd.s32 %s913_s23, %s912_s22  ;;  %247 = vst [vmem:[#allocation2 + $0x10] sm:$0xff] %v1059_v26 }
  0x14   : > { %s911_s11 = sshll.u32 %s223_s10, 3  ;;  %248 = vst [vmem:[#allocation2 + $0x18] sm:$0x3] %v1059_v26  ;;  %s914_s25 = sshll.u32 %s1185_s24, 2 }
  0x15   : > { %s1155_s21 = scalar_lea.vmem %s1249_s0, %s911_s11  ;;  %249 = vst [vmem:[#allocation2 + $0x20] sm:$0xff] %v1059_v26  ;;  %s1223_s28 = scalar_lea.vmem %s1252_s3, %s914_s25 }
  0x16   : > { %v935_v8 = vld [vmem:[%s1155_s21 + $0x10] sm:$0xff]  ;;  %v275_v10 = vld [vmem:[%s1155_s21 + $0x1] sm:$0xff]  ;;  %250 = vst [vmem:[#allocation2 + $0x28] sm:$0x3] %v1059_v26 }
  0x17   : > { %v954_v9 = vld [vmem:[%s1155_s21 + $0x11] sm:$0xff]  ;;  %946 = vmatmul.msk.f32.vlgmr.msra.gmra.mxu2 %vm286_vm1, %v935_v8  ;;  %v265_v11 = vld [vmem:[%s1155_s21] sm:$0xff]  ;;  %918 = vmatmul.msk.f32.vlgmr.msra.gmra.mxu0 %vm286_vm1, %v275_v10  ;;  %251 = vst [vmem:[#allocation2 + $0x30] sm:$0xff] %v1059_v26 }
  0x18   : > { %965 = vmatmul.msk.f32.vlgmr.msra.gmra.mxu3 %vm286_vm1, %v954_v9  ;;  %927 = vmatmul.msk.f32.vlgmr.msra.gmra.mxu1 %vm286_vm1, %v265_v11  ;;  %v936_v12 = vld [vmem:[%s1155_s21 + $0x20] sm:$0xff]  ;;  %v937_v14 = vld [vmem:[%s1155_s21 + $0x30] sm:$0xff]  ;;  %252 = vst [vmem:[#allocation2 + $0x38] sm:$0x3] %v1059_v26 }
  0x19   : > { %v955_v13 = vld [vmem:[%s1155_s21 + $0x21] sm:$0xff]  ;;  %v956_v15 = vld [vmem:[%s1155_s21 + $0x31] sm:$0xff]  ;;  %253 = vst [vmem:[#allocation2 + $0x40] sm:$0xff] %v1059_v26 }
  0x1a   : > { %v938_v16 = vld [vmem:[%s1155_s21 + $0x40] sm:$0xff]  ;;  %v939_v18 = vld [vmem:[%s1155_s21 + $0x50] sm:$0xff]  ;;  %254 = vst [vmem:[#allocation2 + $0x48] sm:$0x3] %v1059_v26 }
  0x1b   : > { %v957_v17 = vld [vmem:[%s1155_s21 + $0x41] sm:$0xff]  ;;  %v958_v19 = vld [vmem:[%s1155_s21 + $0x51] sm:$0xff]  ;;  %255 = vst [vmem:[#allocation2 + $0x50] sm:$0xff] %v1059_v26 }
  0x1c   : > { %v940_v20 = vld [vmem:[%s1155_s21 + $0x60] sm:$0xff]  ;;  %v941_v22 = vld [vmem:[%s1155_s21 + $0x70] sm:$0xff]  ;;  %256 = vst [vmem:[#allocation2 + $0x58] sm:$0x3] %v1059_v26 }
  0x1d   : > { %v959_v21 = vld [vmem:[%s1155_s21 + $0x61] sm:$0xff]  ;;  %v960_v23 = vld [vmem:[%s1155_s21 + $0x71] sm:$0xff]  ;;  %257 = vst [vmem:[#allocation2 + $0x60] sm:$0xff] %v1059_v26 }
  0x1e   : > { %v942_v24 = vld [vmem:[%s1155_s21 + $0x80] sm:$0xff]  ;;  %258 = vst [vmem:[#allocation2 + $0x68] sm:$0x3] %v1059_v26  ;;  %v600_v33 = vld [vmem:[#allocation2 + $0x11] sm:$0xff] }
  0x1f   : > { %947 = vmatmul.msk.f32.gmra.mxu2 %vm286_vm1, %v936_v12  ;;  %919 = vmatmul.msk.f32.gmra.mxu0 %vm286_vm1, %v954_v9  ;;  %v961_v25 = vld [vmem:[%s1155_s21 + $0x81] sm:$0xff]  ;;  %259 = vst [vmem:[#allocation2 + $0x70] sm:$0xff] %v1059_v26  ;;  %v602_v62 = vld [vmem:[#allocation2 + $0x31] sm:$0xff] }
  0x20   : > { %966 = vmatmul.msk.f32.gmra.mxu3 %vm286_vm1, %v955_v13  ;;  %928 = vmatmul.msk.f32.gmra.mxu1 %vm286_vm1, %v935_v8  ;;  %260 = vst [vmem:[#allocation2 + $0x78] sm:$0x3] %v1059_v26  ;;  %v663_v41 = vld [vmem:[#allocation2] ss:$2 sm:$0xf] }
  0x21   : > { %261 = vst [vmem:[#allocation2 + $0x80] sm:$0xff] %v1059_v26  ;;  %v671_v42 = vld [vmem:[#allocation2 + $0x1] ss:$2 sm:$0xf] }
  0x22   : > { %262 = vst [vmem:[#allocation2 + $0x88] sm:$0x3] %v1059_v26  ;;  %v601_v47 = vld [vmem:[#allocation2 + $0x21] sm:$0xff]  ;;  %v678_v48 = vmax.f32 %v663_v41, %v671_v42 }
  0x23   : > { %v683_v52 = vld [vmem:[#allocation2 + $0x2] ss:$2 sm:$0xf] }
  0x24   : > { %v690_v55 = vmax.f32 %v678_v48, %v683_v52 }
  0x27   : > { %948 = vmatmul.msk.f32.gmra.mxu2 %vm286_vm1, %v937_v14  ;;  %920 = vmatmul.msk.f32.gmra.mxu0 %vm286_vm1, %v955_v13 }
  0x28   : > { %967 = vmatmul.msk.f32.gmra.mxu3 %vm286_vm1, %v956_v15  ;;  %929 = vmatmul.msk.f32.gmra.mxu1 %vm286_vm1, %v936_v12 }
  0x2f   : > { %949 = vmatmul.msk.f32.gmra.mxu2 %vm286_vm1, %v938_v16  ;;  %921 = vmatmul.msk.f32.gmra.mxu0 %vm286_vm1, %v956_v15 }
  0x30   : > { %968 = vmatmul.msk.f32.gmra.mxu3 %vm286_vm1, %v957_v17  ;;  %930 = vmatmul.msk.f32.gmra.mxu1 %vm286_vm1, %v937_v14  ;;  %v603_v14 = vld [vmem:[#allocation2 + $0x41] sm:$0xff] }
  0x37   : > { %950 = vmatmul.msk.f32.gmra.mxu2 %vm286_vm1, %v939_v18  ;;  %922 = vmatmul.msk.f32.gmra.mxu0 %vm286_vm1, %v957_v17 }
  0x38   : > { %969 = vmatmul.msk.f32.gmra.mxu3 %vm286_vm1, %v958_v19  ;;  %931 = vmatmul.msk.f32.gmra.mxu1 %vm286_vm1, %v938_v16 }
  0x3f   : > { %951 = vmatmul.msk.f32.gmra.mxu2 %vm286_vm1, %v940_v20  ;;  %923 = vmatmul.msk.f32.gmra.mxu0 %vm286_vm1, %v958_v19 }
  0x40   : > { %970 = vmatmul.msk.f32.gmra.mxu3 %vm286_vm1, %v959_v21  ;;  %932 = vmatmul.msk.f32.gmra.mxu1 %vm286_vm1, %v939_v18 }
  0x47   : > { %952 = vmatmul.msk.f32.gmra.mxu2 %vm286_vm1, %v941_v22  ;;  %924 = vmatmul.msk.f32.gmra.mxu0 %vm286_vm1, %v959_v21 }
  0x48   : > { %971 = vmatmul.msk.f32.gmra.mxu3 %vm286_vm1, %v960_v23  ;;  %933 = vmatmul.msk.f32.gmra.mxu1 %vm286_vm1, %v940_v20 }
  0x4f   : > { %953 = vmatmul.msk.f32.gmra.mxu2 %vm286_vm1, %v942_v24  ;;  %925 = vmatmul.msk.f32.gmra.mxu0 %vm286_vm1, %v960_v23 }
  0x50   : > { %972 = vmatmul.msk.f32.gmra.mxu3 %vm286_vm1, %v961_v25  ;;  %934 = vmatmul.msk.f32.gmra.mxu1 %vm286_vm1, %v941_v22 }
  0x94   : > { %v332_v27 = vpop.f32.mrf.mxu0 }
  0x95   : > { %v400_v28 = vpop.f32.mrf.mxu1 }
  0x96   : > { %v401_v29 = vadd.f32 %v400_v28, %v332_v27 }
  0x9a   : > { %v480_v30 = vpop.f32.mrf.mxu2 }
  0x9b   : > { %v567_v31 = vpop.f32.mrf.mxu3  ;;  %v504_v32 = vadd.f32 %v480_v30, %v401_v29 }
  0x9c   : > { %v335_v36 = vpop.f32.mrf.mxu0 }
  0x9d   : > { %v591_v34 = vadd.f32 %v567_v31, %v504_v32  ;;  %v403_v37 = vpop.f32.mrf.mxu1 }
  0x9e   : > { %v404_v39 = vadd.f32 %v403_v37, %v335_v36  ;;  %v604_v36 = vld [vmem:[#allocation2 + $0x51] sm:$0xff] }
  0x9f   : > { %v608_v38 = vadd.f32 %v600_v33, %v591_v34 }
  0xa1   : > { %v639_v40 = vadd.f32 %v1214_v35, %v608_v38 }
  0xa2   : > { %v483_v43 = vpop.f32.mrf.mxu2 }
  0xa3   : > { %v570_v44 = vpop.f32.mrf.mxu3  ;;  %v647_v45 = vmax.f32 %v639_v40, 0.0  ;;  %v505_v46 = vadd.f32 %v483_v43, %v404_v39 }
  0xa4   : > { %v338_v50 = vpop.f32.mrf.mxu0 }
  0xa5   : > { %655 = vst [vmem:[#allocation2 + $0x11] sm:$0xff] %v647_v45  ;;  %v592_v49 = vadd.f32 %v570_v44, %v505_v46  ;;  %v406_v51 = vpop.f32.mrf.mxu1 }
  0xa6   : > { %v407_v54 = vadd.f32 %v406_v51, %v338_v50 }
  0xa7   : > { %v609_v53 = vadd.f32 %v601_v47, %v592_v49 }
  0xa9   : > { %v640_v56 = vadd.f32 %v1214_v35, %v609_v53 }
  0xaa   : > { %v486_v57 = vpop.f32.mrf.mxu2 }
  0xab   : > { %v573_v58 = vpop.f32.mrf.mxu3  ;;  %v648_v59 = vmax.f32 %v640_v56, 0.0  ;;  %v506_v60 = vadd.f32 %v486_v57, %v407_v54  ;;  %v605_v54 = vld [vmem:[#allocation2 + $0x61] sm:$0xff] }
  0xac   : > { %v694_v61 = vld [vmem:[#allocation2 + $0x10] ss:$2 sm:$0xf]  ;;  %v341_v1 = vpop.f32.mrf.mxu0  ;;  %v706_v3 = vld [vmem:[#allocation2 + $0x11] ss:$2 sm:$0xf] }
  0xad   : > { %v701_v63 = vmax.f32 %v690_v55, %v694_v61  ;;  %656 = vst [vmem:[#allocation2 + $0x21] sm:$0xff] %v648_v59  ;;  %v593_v0 = vadd.f32 %v573_v58, %v506_v60  ;;  %v409_v2 = vpop.f32.mrf.mxu1  ;;  %v718_v10 = vld [vmem:[#allocation2 + $0x12] ss:$2 sm:$0xf] }
  0xae   : > { %v410_v5 = vadd.f32 %v409_v2, %v341_v1 }
  0xaf   : > { %v610_v4 = vadd.f32 %v602_v62, %v593_v0  ;;  %v713_v6 = vmax.f32 %v701_v63, %v706_v3 }
  0xb1   : > { %v641_v7 = vadd.f32 %v1214_v35, %v610_v4  ;;  %v725_v13 = vmax.f32 %v713_v6, %v718_v10 }
  0xb2   : > { %v489_v8 = vpop.f32.mrf.mxu2 }
  0xb3   : > { %v576_v9 = vpop.f32.mrf.mxu3  ;;  %v649_v11 = vmax.f32 %v641_v7, 0.0  ;;  %v507_v12 = vadd.f32 %v489_v8, %v410_v5 }
  0xb4   : > { %v730_v15 = vld [vmem:[#allocation2 + $0x20] ss:$2 sm:$0xf]  ;;  %v344_v17 = vpop.f32.mrf.mxu0  ;;  %v673_v20 = vld [vmem:[#allocation2 + $0x21] ss:$2 sm:$0xf] }
  0xb5   : > { %v594_v16 = vadd.f32 %v576_v9, %v507_v12  ;;  %v412_v18 = vpop.f32.mrf.mxu1  ;;  %v665_v19 = vld [vmem:[#allocation2 + $0x20] ss:$2 sm:$0xf]  ;;  %v737_v21 = vmax.f32 %v725_v13, %v730_v15  ;;  %v742_v22 = vld [vmem:[#allocation2 + $0x21] ss:$2 sm:$0xf] }
  0xb6   : > { %657 = vst [vmem:[#allocation2 + $0x31] sm:$0xff] %v649_v11  ;;  %v413_v24 = vadd.f32 %v412_v18, %v344_v17  ;;  %v679_v26 = vmax.f32 %v665_v19, %v673_v20  ;;  %v754_v27 = vld [vmem:[#allocation2 + $0x22] ss:$2 sm:$0xf]  ;;  %v606_v11 = vld [vmem:[#allocation2 + $0x71] sm:$0xff] }
  0xb7   : > { %v611_v23 = vadd.f32 %v603_v14, %v594_v16  ;;  %v749_v25 = vmax.f32 %v737_v21, %v742_v22  ;;  %v685_v34 = vld [vmem:[#allocation2 + $0x22] ss:$2 sm:$0xf] }
  0xb8   : > { %v691_v37 = vmax.f32 %v679_v26, %v685_v34 }
  0xb9   : > { %v642_v28 = vadd.f32 %v1214_v35, %v611_v23  ;;  %v761_v29 = vmax.f32 %v749_v25, %v754_v27 }
  0xba   : > { %v492_v30 = vpop.f32.mrf.mxu2 }
  0xbb   : > { %v579_v31 = vpop.f32.mrf.mxu3  ;;  %v650_v32 = vmax.f32 %v642_v28, 0.0  ;;  %v508_v33 = vadd.f32 %v492_v30, %v413_v24  ;;  %765 = vst [vmem:[%s1223_s28] sm:$0xf] %v761_v29  ;;  %v607_v29 = vld [vmem:[#allocation2 + $0x81] sm:$0xff] }
  0xbc   : > { %v347_v39 = vpop.f32.mrf.mxu0 }
  0xbd   : > { %658 = vst [vmem:[#allocation2 + $0x41] sm:$0xff] %v650_v32  ;;  %v595_v38 = vadd.f32 %v579_v31, %v508_v33  ;;  %v415_v40 = vpop.f32.mrf.mxu1  ;;  %v696_v41 = vld [vmem:[#allocation2 + $0x30] ss:$2 sm:$0xf] }
  0xbe   : > { %v702_v42 = vmax.f32 %v691_v37, %v696_v41  ;;  %v416_v44 = vadd.f32 %v415_v40, %v347_v39  ;;  %v708_v45 = vld [vmem:[#allocation2 + $0x31] ss:$2 sm:$0xf]  ;;  %v720_v50 = vld [vmem:[#allocation2 + $0x32] ss:$2 sm:$0xf] }
  0xbf   : > { %v612_v43 = vadd.f32 %v604_v36, %v595_v38 }
  0xc0   : > { %v714_v46 = vmax.f32 %v702_v42, %v708_v45 }
  0xc1   : > { %v643_v47 = vadd.f32 %v1214_v35, %v612_v43 }
  0xc2   : > { %v495_v48 = vpop.f32.mrf.mxu2  ;;  %v726_v53 = vmax.f32 %v714_v46, %v720_v50 }
  0xc3   : > { %v582_v49 = vpop.f32.mrf.mxu3  ;;  %v651_v51 = vmax.f32 %v643_v47, 0.0  ;;  %v509_v52 = vadd.f32 %v495_v48, %v416_v44 }
  0xc4   : > { %v732_v55 = vld [vmem:[#allocation2 + $0x40] ss:$2 sm:$0xf]  ;;  %v350_v57 = vpop.f32.mrf.mxu0  ;;  %v675_v60 = vld [vmem:[#allocation2 + $0x41] ss:$2 sm:$0xf] }
  0xc5   : > { %v596_v56 = vadd.f32 %v582_v49, %v509_v52  ;;  %v418_v58 = vpop.f32.mrf.mxu1  ;;  %v667_v59 = vld [vmem:[#allocation2 + $0x40] ss:$2 sm:$0xf]  ;;  %v738_v61 = vmax.f32 %v726_v53, %v732_v55  ;;  %v744_v62 = vld [vmem:[#allocation2 + $0x41] ss:$2 sm:$0xf] }
  0xc6   : > { %659 = vst [vmem:[#allocation2 + $0x51] sm:$0xff] %v651_v51  ;;  %v419_v0 = vadd.f32 %v418_v58, %v350_v57  ;;  %v680_v2 = vmax.f32 %v667_v59, %v675_v60  ;;  %v756_v3 = vld [vmem:[#allocation2 + $0x42] ss:$2 sm:$0xf] }
  0xc7   : > { %v613_v63 = vadd.f32 %v605_v54, %v596_v56  ;;  %v750_v1 = vmax.f32 %v738_v61, %v744_v62  ;;  %v687_v10 = vld [vmem:[#allocation2 + $0x42] ss:$2 sm:$0xf] }
  0xc8   : > { %v692_v12 = vmax.f32 %v680_v2, %v687_v10 }
  0xc9   : > { %v644_v4 = vadd.f32 %v1214_v35, %v613_v63  ;;  %v762_v5 = vmax.f32 %v750_v1, %v756_v3 }
  0xca   : > { %v498_v6 = vpop.f32.mrf.mxu2 }
  0xcb   : > { %v585_v7 = vpop.f32.mrf.mxu3  ;;  %v652_v8 = vmax.f32 %v644_v4, 0.0  ;;  %v510_v9 = vadd.f32 %v498_v6, %v419_v0  ;;  %766 = vst [vmem:[%s1223_s28 + $0x4] sm:$0xf] %v762_v5 }
  0xcc   : > { %v353_v14 = vpop.f32.mrf.mxu0 }
  0xcd   : > { %660 = vst [vmem:[#allocation2 + $0x61] sm:$0xff] %v652_v8  ;;  %v597_v13 = vadd.f32 %v585_v7, %v510_v9  ;;  %v421_v15 = vpop.f32.mrf.mxu1  ;;  %v698_v16 = vld [vmem:[#allocation2 + $0x50] ss:$2 sm:$0xf] }
  0xce   : > { %v703_v17 = vmax.f32 %v692_v12, %v698_v16  ;;  %v422_v19 = vadd.f32 %v421_v15, %v353_v14  ;;  %v710_v20 = vld [vmem:[#allocation2 + $0x51] ss:$2 sm:$0xf]  ;;  %v722_v25 = vld [vmem:[#allocation2 + $0x52] ss:$2 sm:$0xf] }
  0xcf   : > { %v614_v18 = vadd.f32 %v606_v11, %v597_v13 }
  0xd0   : > { %v715_v21 = vmax.f32 %v703_v17, %v710_v20 }
  0xd1   : > { %v645_v22 = vadd.f32 %v1214_v35, %v614_v18 }
  0xd2   : > { %v501_v23 = vpop.f32.mrf.mxu2  ;;  %v727_v28 = vmax.f32 %v715_v21, %v722_v25 }
  0xd3   : > { %v588_v24 = vpop.f32.mrf.mxu3  ;;  %v653_v26 = vmax.f32 %v645_v22, 0.0  ;;  %v511_v27 = vadd.f32 %v501_v23, %v422_v19 }
  0xd4   : > { %v734_v30 = vld [vmem:[#allocation2 + $0x60] ss:$2 sm:$0xf]  ;;  %v677_v33 = vld [vmem:[#allocation2 + $0x61] ss:$2 sm:$0xf] }
  0xd5   : > { %v598_v31 = vadd.f32 %v588_v24, %v511_v27  ;;  %v669_v32 = vld [vmem:[#allocation2 + $0x60] ss:$2 sm:$0xf]  ;;  %v739_v34 = vmax.f32 %v727_v28, %v734_v30  ;;  %v746_v36 = vld [vmem:[#allocation2 + $0x61] ss:$2 sm:$0xf] }
  0xd6   : > { %661 = vst [vmem:[#allocation2 + $0x71] sm:$0xff] %v653_v26  ;;  %v681_v39 = vmax.f32 %v669_v32, %v677_v33  ;;  %v758_v40 = vld [vmem:[#allocation2 + $0x62] ss:$2 sm:$0xf] }
  0xd7   : > { %v615_v37 = vadd.f32 %v607_v29, %v598_v31  ;;  %v751_v38 = vmax.f32 %v739_v34, %v746_v36  ;;  %v689_v44 = vld [vmem:[#allocation2 + $0x62] ss:$2 sm:$0xf] }
  0xd8   : > { %v693_v45 = vmax.f32 %v681_v39, %v689_v44 }
  0xd9   : > { %v646_v41 = vadd.f32 %v1214_v35, %v615_v37  ;;  %v763_v42 = vmax.f32 %v751_v38, %v758_v40 }
  0xdb   : > { %v654_v43 = vmax.f32 %v646_v41, 0.0  ;;  %767 = vst [vmem:[%s1223_s28 + $0x8] sm:$0xf] %v763_v42 }
  0xdd   : > { %662 = vst [vmem:[#allocation2 + $0x81] sm:$0xff] %v654_v43  ;;  %v700_v46 = vld [vmem:[#allocation2 + $0x70] ss:$2 sm:$0xf] }
  0xde   : > { %v704_v47 = vmax.f32 %v693_v45, %v700_v46  ;;  %v712_v48 = vld [vmem:[#allocation2 + $0x71] ss:$2 sm:$0xf]  ;;  %v724_v50 = vld [vmem:[#allocation2 + $0x72] ss:$2 sm:$0xf] }
  0xe0   : > { %v716_v49 = vmax.f32 %v704_v47, %v712_v48 }
  0xe2   : > { %v728_v51 = vmax.f32 %v716_v49, %v724_v50 }
  0xe4   : > { %v736_v52 = vld [vmem:[#allocation2 + $0x80] ss:$2 sm:$0xf]  ;;  %v748_v54 = vld [vmem:[#allocation2 + $0x81] ss:$2 sm:$0xf] }
  0xe5   : > { %v740_v53 = vmax.f32 %v728_v51, %v736_v52  ;;  %v760_v56 = vld [vmem:[#allocation2 + $0x82] ss:$2 sm:$0xf] }
  0xe7   : > { %v752_v55 = vmax.f32 %v740_v53, %v748_v54 }
  0xe9   : > { %v764_v57 = vmax.f32 %v752_v55, %v760_v56 }
  0xeb   : > { %768 = vst [vmem:[%s1223_s28 + $0xc] sm:$0xf] %v764_v57 }
  0xec PF: > { %s13_s16 = sadd.s32 1, %s1057_s16   ;;  %s1253_s12 = smov %s1049_s14 }
  0xed   : > { %p10_p7 = scmp.ge.s32.totalorder %s13_s16, 10   ;;  %s1254_s13 = smov %s1053_s15 }
  0xee   : > { %s1255_s14 = smov %s1258_s17  ;;  %s1256_s15 = smov %s1262_s18 }
  0xef   :  { %12 = sbr.rel (!%p10_p7) target bundleno = 3 (0x3), region = 112 }

</bundles_post_ra>
